<compile_context>
chip_gen: v5e
topology: v5e:2x2
jax: 0.10.0
libtpu: 0.0.40
codegen_flags: <defaults>
</compile_context>

<pallas_src>
import numpy as np

import jax
import jax.numpy as jnp
from jax.experimental import pallas as pl
from jax.experimental.pallas import tpu as pltpu


# ----------------------------- configuration --------------------------------
BS = 2                 # batch size (example)
N_SAMPLES = 64         # samples per batch element (example)
N_FEATURES_IN = 16     # triplane feature dim
N_CHANNELS_OUT = 3     # rgb channels
HIDDEN = 64            # OSGDecoder.hidden_dim
NUM_FREQS = 4          # Embedder num_freqs (mode='on')
AGGREGATION_MODE = "prod"    # 'prod' or 'sum'
USE_COORDINATES = True
USE_DIRECTIONS = True

EMB_DIM = 3 + 3 * NUM_FREQS * 2          # include_input + sin/cos per freq -> 27
INPUT_DIM = (N_FEATURES_IN
             + (EMB_DIM if USE_COORDINATES else 0)
             + (EMB_DIM if USE_DIRECTIONS else 0))
OUT_DIM = 1 + N_CHANNELS_OUT
CD_DIM = (3 if USE_COORDINATES else 0) + (3 if USE_DIRECTIONS else 0)
CD_PAD = 8                               # coords+dirs rows, sublane padded
N_PE_BLOCKS = 1 + 2 * NUM_FREQS          # include_input + (sin, cos) per freq
CDE_COLS = CD_PAD * N_PE_BLOCKS          # K of the coords/dirs/PE matmul (72)

MAX_TILE = 4096                          # sample rows per grid step (multiple of 128)
VMEM_LIMIT_BYTES = 48 * 1024 * 1024      # headroom for tile=4096 on every chip

# log-sampled frequency bands: 2 ** linspace(0, num_freqs-1, num_freqs)
FREQ_BANDS = tuple(float(2.0 ** f) for f in np.linspace(0.0, NUM_FREQS - 1, NUM_FREQS))


# ------------------------------- kernel --------------------------------------
def osg_decoder_kernel(feat_ref, cdt_ref, w1f_ref, w1cde_ref, b1t_ref,
                       w2t_ref, b2t_ref, out_ref):
    # feat_ref : [3, TILE, F]        triplane features (this tile)
    # cdt_ref  : [CD_PAD, TILE]      rows 0..2 coords, 3..5 dirs, 6..7 zero pad
    # w1f_ref  : [HIDDEN, F]         W1 rows for raw features (transposed)
    # w1cde_ref: [HIDDEN, CDE_COLS]  W1 rows for cd + PE (transposed, kernel order)
    # b1t_ref  : [HIDDEN, 1]
    # w2t_ref  : [OUT_DIM, HIDDEN]
    # b2t_ref  : [OUT_DIM, 1]
    # out_ref  : [OUT_DIM, TILE]     row 0 = sigma, rows 1.. = rgb

    # --- triplane aggregation (reduction over the 3 planes) ---
    f0, f1, f2 = feat_ref[0], feat_ref[1], feat_ref[2]
    if AGGREGATION_MODE == "sum":
        agg = f0 + f1 + f2                                   # [TILE, F]
    else:  # 'prod'
        agg = f0 * f1 * f2

    # --- first Linear, transposed: hT[h, n] = sum_f W1f[h, f] * agg[n, f] ---
    hT = jax.lax.dot_general(w1f_ref[...], agg, (((1,), (1,)), ((), ())),
                             preferred_element_type=jnp.float32)   # [HIDDEN, TILE]

    if CD_DIM > 0:
        cdt = cdt_ref[...]                                   # [CD_PAD, TILE] lane-dense
        # Positional encoding: sin/cos evaluated once at the base band (EUP),
        # power-of-two harmonics derived with double-angle identities (VPU).
        pieces = [cdt]
        s = c = None
        prev = None
        for freq in FREQ_BANDS:
            if prev is not None and freq == 2.0 * prev:
                s, c = 2.0 * s * c, 1.0 - 2.0 * (s * s)      # exact for power-of-2 bands
            else:
                arg = cdt if freq == 1.0 else cdt * freq
                s, c = jnp.sin(arg), jnp.cos(arg)
            pieces.append(s)
            pieces.append(c)
            prev = freq
        # 8-row pieces -> sublane-aligned concat, no lane shuffles.
        cde = jnp.concatenate(pieces, axis=0)                # [CDE_COLS, TILE]
        hT = hT + jax.lax.dot_general(w1cde_ref[...], cde,
                                      (((1,), (0,)), ((), ())),
                                      preferred_element_type=jnp.float32)

    hT = hT + b1t_ref[...]                                   # bias, lane broadcast

    # --- Softplus (beta=1, threshold=20), lane-dense on [HIDDEN, TILE] ---
    hT = jnp.where(hT > 20.0, hT, jnp.log(1.0 + jnp.exp(jnp.minimum(hT, 20.0))))

    # --- second Linear, already transposed -> [OUT_DIM, TILE] ---
    oT = jax.lax.dot_general(w2t_ref[...], hT, (((1,), (0,)), ((), ())),
                             preferred_element_type=jnp.float32) + b2t_ref[...]

    # --- heads: row 0 = sigma (raw); rows 1.. = scaled sigmoid (stable form) ---
    out_ref[0:1, :] = oT[0:1, :]
    logits = oT[1:, :]
    neg = logits < 0.0
    z = jnp.exp(jnp.where(neg, logits, -logits))             # exp(-|x|), never overflows
    inv = 1.0 / (1.0 + z)
    sig = jnp.where(neg, z * inv, inv)
    out_ref[1:, :] = sig * (1.0 + 2.0 * 0.001) - 0.001


# ------------------------------ wrapper ---------------------------------------
def _round_up(x, m):
    return (x + m - 1) // m * m


def _cde_perm_and_mask():
    """W1 row index (torch concat order) for each column of the kernel's
    coords/dirs/PE weight block, plus a 0/1 mask for the sublane-pad columns.

    torch x layout : [features(16) | emb(coords)(27) | emb(dirs)(27)],
                     emb(v) = [v, sin(v f0), cos(v f0), sin(v f1), cos(v f1), ...]
    kernel cde rows: [c,d | sin(c f0),sin(d f0) | cos(c f0),cos(d f0) | sin(.. f1) ...],
                     each block padded to CD_PAD rows.
    """
    c_off = N_FEATURES_IN
    d_off = N_FEATURES_IN + (EMB_DIM if USE_COORDINATES else 0)
    perm, mask = [], []

    def add_block(rows):
        perm.extend(rows)
        mask.extend([1.0] * len(rows))
        pad = CD_PAD - len(rows)
        perm.extend([0] * pad)
        mask.extend([0.0] * pad)

    rows = []
    if USE_COORDINATES:
        rows += [c_off + k for k in range(3)]
    if USE_DIRECTIONS:
        rows += [d_off + k for k in range(3)]
    add_block(rows)                                           # include_input block
    for i in range(NUM_FREQS):
        for p in range(2):                                    # 0 = sin, 1 = cos
            rows = []
            if USE_COORDINATES:
                rows += [c_off + 3 + 6 * i + 3 * p + k for k in range(3)]
            if USE_DIRECTIONS:
                rows += [d_off + 3 + 6 * i + 3 * p + k for k in range(3)]
            add_block(rows)
    assert len(perm) == CDE_COLS
    return np.asarray(perm, np.int32), np.asarray(mask, np.float32)


_CDE_PERM, _CDE_MASK = _cde_perm_and_mask()


def osg_decoder_forward(features, coordinates, directions, params, max_tile=MAX_TILE):
    """features [bs, 3, ns, F]; coordinates/directions [bs, ns, 3] -> dict(rgb, sigma)."""
    bs, n_planes, ns, f_dim = features.shape
    assert n_planes == 3 and f_dim == N_FEATURES_IN

    # --- tiling over the sample axis (multiple of 128 so stores stay lane-dense) ---
    if ns <= max_tile:
        tile = _round_up(ns, 128)
        ns_pad = tile
    else:
        tile = max_tile
        ns_pad = _round_up(ns, tile)
    pad = ns_pad - ns
    if pad:
        features = jnp.pad(features, ((0, 0), (0, 0), (0, pad), (0, 0)))
        coordinates = jnp.pad(coordinates, ((0, 0), (0, pad), (0, 0)))
        directions = jnp.pad(directions, ((0, 0), (0, pad), (0, 0)))

    # --- coords+dirs transposed & sublane-padded to [bs, CD_PAD, ns_pad] (tiny repack) ---
    cd_parts = []
    if USE_COORDINATES:
        cd_parts.append(coordinates)
    if USE_DIRECTIONS:
        cd_parts.append(directions)
    if cd_parts:
        cd = jnp.concatenate(cd_parts, axis=-1)               # [bs, ns_pad, CD_DIM]
        cdt = jnp.swapaxes(cd, 1, 2)                          # [bs, CD_DIM, ns_pad]
        cdt = jnp.pad(cdt, ((0, 0), (0, CD_PAD - CD_DIM), (0, 0)))
    else:
        cdt = jnp.zeros((bs, CD_PAD, ns_pad), features.dtype)  # unused dummy

    # --- parameter prep (tiny, done once outside the hot loop) ---
    w1, b1, w2, b2 = params                                   # [in,H], [1,H], [H,out], [1,out]
    w1f_t = jnp.transpose(w1[:N_FEATURES_IN, :])                        # [H, F]
    w1cde_t = jnp.transpose(w1[_CDE_PERM, :] * _CDE_MASK[:, None])      # [H, CDE_COLS]
    b1t = jnp.reshape(b1, (1, HIDDEN)).T                                # [H, 1]
    w2t = jnp.transpose(w2)                                             # [OUT_DIM, H]
    b2t = jnp.reshape(b2, (1, OUT_DIM)).T                               # [OUT_DIM, 1]

    grid = (bs, ns_pad // tile)

    out = pl.pallas_call(
        osg_decoder_kernel,
        grid=grid,
        in_specs=[
            pl.BlockSpec((None, 3, tile, f_dim), lambda b, t: (b, 0, t, 0)),
            pl.BlockSpec((None, CD_PAD, tile), lambda b, t: (b, 0, t)),
            pl.BlockSpec((HIDDEN, N_FEATURES_IN), lambda b, t: (0, 0)),
            pl.BlockSpec((HIDDEN, CDE_COLS), lambda b, t: (0, 0)),
            pl.BlockSpec((HIDDEN, 1), lambda b, t: (0, 0)),
            pl.BlockSpec((OUT_DIM, HIDDEN), lambda b, t: (0, 0)),
            pl.BlockSpec((OUT_DIM, 1), lambda b, t: (0, 0)),
        ],
        out_specs=pl.BlockSpec((None, OUT_DIM, tile), lambda b, t: (b, 0, t)),
        out_shape=jax.ShapeDtypeStruct((bs, OUT_DIM, ns_pad), jnp.float32),
        compiler_params=pltpu.CompilerParams(
            dimension_semantics=("parallel", "parallel"),
            vmem_limit_bytes=VMEM_LIMIT_BYTES),
    )(features, cdt, w1f_t, w1cde_t, b1t, w2t, b2t)

    out = out[:, :, :ns]                                      # drop tail padding
    sigma = jnp.swapaxes(out[:, 0:1, :], 1, 2)                # [bs, ns, 1]
    rgb = jnp.swapaxes(out[:, 1:, :], 1, 2)                   # [bs, ns, C]
    return {"rgb": rgb, "sigma": sigma}
    # TODO(synk): if the upstream triplane sampler can emit bf16 features, keep them
    # bf16 through the DMA / first dot (f32 accumulation) to halve the HBM stream.


# ------------------------- pure-JAX reference ---------------------------------
def embed_ref(v):
    outs = [v]
    for freq in FREQ_BANDS:
        outs.append(jnp.sin(v * freq))
        outs.append(jnp.cos(v * freq))
    return jnp.concatenate(outs, axis=-1)


def osg_decoder_ref(features, coordinates, directions, params):
    w1, b1, w2, b2 = params
    if AGGREGATION_MODE == "sum":
        agg = features.sum(axis=1)
    else:
        agg = features.prod(axis=1)
    parts = [agg]
    if USE_COORDINATES:
        parts.append(embed_ref(coordinates))
    if USE_DIRECTIONS:
        parts.append(embed_ref(directions))
    x = jnp.concatenate(parts, axis=-1)
    z = x @ w1 + jnp.reshape(b1, (HIDDEN,))
    h = jnp.where(z > 20.0, z, jnp.log1p(jnp.exp(jnp.minimum(z, 20.0))))
    o = h @ w2 + jnp.reshape(b2, (OUT_DIM,))
    rgb = jax.nn.sigmoid(o[..., 1:]) * (1.0 + 2.0 * 0.001) - 0.001
    sigma = o[..., 0:1]
    return {"rgb": rgb, "sigma": sigma}


# --------------------------------- main ----------------------------------------
if __name__ == "__main__":
    key = jax.random.PRNGKey(0)
    k_feat, k_coord, k_dir, k_w1, k_b1, k_w2, k_b2 = jax.random.split(key, 7)

    features = jax.random.normal(k_feat, (BS, 3, N_SAMPLES, N_FEATURES_IN), jnp.float32)
    coordinates = jax.random.uniform(k_coord, (BS, N_SAMPLES, 3), jnp.float32, -1.0, 1.0)
    directions = jax.random.normal(k_dir, (BS, N_SAMPLES, 3), jnp.float32)
    directions = directions / jnp.linalg.norm(directions, axis=-1, keepdims=True)

    # Deterministic synthetic parameters (Linear stored as [in, out]).
    w1 = jax.random.normal(k_w1, (INPUT_DIM, HIDDEN), jnp.float32) * (1.0 / np.sqrt(INPUT_DIM))
    b1 = jax.random.normal(k_b1, (1, HIDDEN), jnp.float32) * 0.01
    w2 = jax.random.normal(k_w2, (HIDDEN, OUT_DIM), jnp.float32) * (1.0 / np.sqrt(HIDDEN))
    b2 = jax.random.normal(k_b2, (1, OUT_DIM), jnp.float32) * 0.01
    params = (w1, b1, w2, b2)

    out = osg_decoder_forward(features, coordinates, directions, params)
    jax.block_until_ready(out)

    ref = osg_decoder_ref(features, coordinates, directions, params)
    np.testing.assert_allclose(np.asarray(out["rgb"]), np.asarray(ref["rgb"]), atol=1e-4, rtol=1e-4)
    np.testing.assert_allclose(np.asarray(out["sigma"]), np.asarray(ref["sigma"]), atol=1e-4, rtol=1e-4)

    print("KERNEL_OK")
</pallas_src>

<mosaic_0001>
module attributes {stable_mosaic.version = 11 : i64} {
  func.func @osg_decoder_kernel(%arg0: i32, %arg1: i32, %arg2: memref<1x3x128x16xf32, #tpu.memory_space<vmem>>, %arg3: memref<1x8x128xf32, #tpu.memory_space<vmem>>, %arg4: memref<64x16xf32, #tpu.memory_space<vmem>>, %arg5: memref<64x72xf32, #tpu.memory_space<vmem>>, %arg6: memref<64x1xf32, #tpu.memory_space<vmem>>, %arg7: memref<4x64xf32, #tpu.memory_space<vmem>>, %arg8: memref<4x1xf32, #tpu.memory_space<vmem>>, %arg9: memref<1x4x128xf32, #tpu.memory_space<vmem>>) attributes {dimension_semantics = [#tpu.dimension_semantics<parallel>, #tpu.dimension_semantics<parallel>], iteration_bounds = array<i64: 2, 1>, scalar_prefetch = 0 : i64, scratch_operands = 0 : i64, tpu.core_type = #tpu.core_type<tc>, window_params = [{transform_indices = @transform_0, window_bounds = array<i64: 1, 3, 128, 16>}, {transform_indices = @transform_1, window_bounds = array<i64: 1, 8, 128>}, {pipeline_mode = #tpu.pipeline_mode<synchronous>, transform_indices = @transform_2, window_bounds = array<i64: 64, 16>}, {pipeline_mode = #tpu.pipeline_mode<synchronous>, transform_indices = @transform_3, window_bounds = array<i64: 64, 72>}, {pipeline_mode = #tpu.pipeline_mode<synchronous>, transform_indices = @transform_4, window_bounds = array<i64: 64, 1>}, {pipeline_mode = #tpu.pipeline_mode<synchronous>, transform_indices = @transform_5, window_bounds = array<i64: 4, 64>}, {pipeline_mode = #tpu.pipeline_mode<synchronous>, transform_indices = @transform_6, window_bounds = array<i64: 4, 1>}, {transform_indices = @transform_7, window_bounds = array<i64: 1, 4, 128>}]} {
    %c0 = arith.constant 0 : index
    %c0_0 = arith.constant 0 : index
    %c0_1 = arith.constant 0 : index
    %c0_2 = arith.constant 0 : index
    %0 = vector.load %arg2[%c0, %c0_0, %c0_1, %c0_2] : memref<1x3x128x16xf32, #tpu.memory_space<vmem>>, vector<1x1x128x16xf32>
    %1 = vector.shape_cast %0 : vector<1x1x128x16xf32> to vector<128x16xf32>
    %c0_3 = arith.constant 0 : index
    %c1 = arith.constant 1 : index
    %c0_4 = arith.constant 0 : index
    %c0_5 = arith.constant 0 : index
    %2 = vector.load %arg2[%c0_3, %c1, %c0_4, %c0_5] : memref<1x3x128x16xf32, #tpu.memory_space<vmem>>, vector<1x1x128x16xf32>
    %3 = vector.shape_cast %2 : vector<1x1x128x16xf32> to vector<128x16xf32>
    %c0_6 = arith.constant 0 : index
    %c2 = arith.constant 2 : index
    %c0_7 = arith.constant 0 : index
    %c0_8 = arith.constant 0 : index
    %4 = vector.load %arg2[%c0_6, %c2, %c0_7, %c0_8] : memref<1x3x128x16xf32, #tpu.memory_space<vmem>>, vector<1x1x128x16xf32>
    %5 = vector.shape_cast %4 : vector<1x1x128x16xf32> to vector<128x16xf32>
    %6 = arith.mulf %1, %3 : vector<128x16xf32>
    %7 = arith.mulf %6, %5 : vector<128x16xf32>
    %c0_9 = arith.constant 0 : index
    %c0_10 = arith.constant 0 : index
    %8 = vector.load %arg4[%c0_9, %c0_10] : memref<64x16xf32, #tpu.memory_space<vmem>>, vector<64x16xf32>
    %cst = arith.constant dense<0.000000e+00> : vector<64x128xf32>
    %9 = tpu.matmul %8, %7, %cst {dimension_numbers = #tpu.dot_dimension_numbers<[1], [1], [0], [0], [0, 0, 1, 0], [], []>} : vector<64x16xf32>, vector<128x16xf32>, vector<64x128xf32> -> vector<64x128xf32>
    %c0_11 = arith.constant 0 : index
    %c0_12 = arith.constant 0 : index
    %c0_13 = arith.constant 0 : index
    %10 = vector.load %arg3[%c0_11, %c0_12, %c0_13] : memref<1x8x128xf32, #tpu.memory_space<vmem>>, vector<1x8x128xf32>
    %11 = vector.shape_cast %10 : vector<1x8x128xf32> to vector<8x128xf32>
    %12 = math.sin %11 : vector<8x128xf32>
    %13 = math.cos %11 : vector<8x128xf32>
    %cst_14 = arith.constant 2.000000e+00 : f32
    %14 = vector.broadcast %cst_14 : f32 to vector<8x128xf32>
    %15 = arith.mulf %14, %12 : vector<8x128xf32>
    %16 = arith.mulf %15, %13 : vector<8x128xf32>
    %17 = arith.mulf %12, %12 : vector<8x128xf32>
    %cst_15 = arith.constant 2.000000e+00 : f32
    %18 = vector.broadcast %cst_15 : f32 to vector<8x128xf32>
    %19 = arith.mulf %18, %17 : vector<8x128xf32>
    %cst_16 = arith.constant 1.000000e+00 : f32
    %20 = vector.broadcast %cst_16 : f32 to vector<8x128xf32>
    %21 = arith.subf %20, %19 : vector<8x128xf32>
    %cst_17 = arith.constant 2.000000e+00 : f32
    %22 = vector.broadcast %cst_17 : f32 to vector<8x128xf32>
    %23 = arith.mulf %22, %16 : vector<8x128xf32>
    %24 = arith.mulf %23, %21 : vector<8x128xf32>
    %25 = arith.mulf %16, %16 : vector<8x128xf32>
    %cst_18 = arith.constant 2.000000e+00 : f32
    %26 = vector.broadcast %cst_18 : f32 to vector<8x128xf32>
    %27 = arith.mulf %26, %25 : vector<8x128xf32>
    %cst_19 = arith.constant 1.000000e+00 : f32
    %28 = vector.broadcast %cst_19 : f32 to vector<8x128xf32>
    %29 = arith.subf %28, %27 : vector<8x128xf32>
    %cst_20 = arith.constant 2.000000e+00 : f32
    %30 = vector.broadcast %cst_20 : f32 to vector<8x128xf32>
    %31 = arith.mulf %30, %24 : vector<8x128xf32>
    %32 = arith.mulf %31, %29 : vector<8x128xf32>
    %33 = arith.mulf %24, %24 : vector<8x128xf32>
    %cst_21 = arith.constant 2.000000e+00 : f32
    %34 = vector.broadcast %cst_21 : f32 to vector<8x128xf32>
    %35 = arith.mulf %34, %33 : vector<8x128xf32>
    %cst_22 = arith.constant 1.000000e+00 : f32
    %36 = vector.broadcast %cst_22 : f32 to vector<8x128xf32>
    %37 = arith.subf %36, %35 : vector<8x128xf32>
    %38 = tpu.concatenate %11, %12, %13, %16, %21, %24, %29, %32, %37 in 0 : vector<8x128xf32>, vector<8x128xf32>, vector<8x128xf32>, vector<8x128xf32>, vector<8x128xf32>, vector<8x128xf32>, vector<8x128xf32>, vector<8x128xf32>, vector<8x128xf32> -> vector<72x128xf32>
    %c0_23 = arith.constant 0 : index
    %c0_24 = arith.constant 0 : index
    %39 = vector.load %arg5[%c0_23, %c0_24] : memref<64x72xf32, #tpu.memory_space<vmem>>, vector<64x72xf32>
    %cst_25 = arith.constant dense<0.000000e+00> : vector<64x128xf32>
    %40 = tpu.matmul %39, %38, %cst_25 {dimension_numbers = #tpu.dot_dimension_numbers<[1], [0], [0], [1], [0, 0, 1, 1], [], []>} : vector<64x72xf32>, vector<72x128xf32>, vector<64x128xf32> -> vector<64x128xf32>
    %41 = arith.addf %9, %40 : vector<64x128xf32>
    %c0_26 = arith.constant 0 : index
    %c0_27 = arith.constant 0 : index
    %42 = vector.load %arg6[%c0_26, %c0_27] : memref<64x1xf32, #tpu.memory_space<vmem>>, vector<64x1xf32>
    %43 = vector.broadcast %42 : vector<64x1xf32> to vector<64x128xf32>
    %44 = arith.addf %41, %43 : vector<64x128xf32>
    %cst_28 = arith.constant 2.000000e+01 : f32
    %45 = vector.broadcast %cst_28 : f32 to vector<64x128xf32>
    %46 = arith.cmpf ogt, %44, %45 : vector<64x128xf32>
    %cst_29 = arith.constant 2.000000e+01 : f32
    %47 = vector.broadcast %cst_29 : f32 to vector<64x128xf32>
    %48 = arith.minimumf %44, %47 : vector<64x128xf32>
    %49 = math.exp %48 : vector<64x128xf32>
    %cst_30 = arith.constant 1.000000e+00 : f32
    %50 = vector.broadcast %cst_30 : f32 to vector<64x128xf32>
    %51 = arith.addf %50, %49 : vector<64x128xf32>
    %52 = math.log %51 : vector<64x128xf32>
    %53 = arith.select %46, %44, %52 : vector<64x128xi1>, vector<64x128xf32>
    %c0_31 = arith.constant 0 : index
    %c0_32 = arith.constant 0 : index
    %54 = vector.load %arg7[%c0_31, %c0_32] : memref<4x64xf32, #tpu.memory_space<vmem>>, vector<4x64xf32>
    %cst_33 = arith.constant dense<0.000000e+00> : vector<4x128xf32>
    %55 = tpu.matmul %54, %53, %cst_33 {dimension_numbers = #tpu.dot_dimension_numbers<[1], [0], [0], [1], [0, 0, 1, 1], [], []>} : vector<4x64xf32>, vector<64x128xf32>, vector<4x128xf32> -> vector<4x128xf32>
    %c0_34 = arith.constant 0 : index
    %c0_35 = arith.constant 0 : index
    %56 = vector.load %arg8[%c0_34, %c0_35] : memref<4x1xf32, #tpu.memory_space<vmem>>, vector<4x1xf32>
    %57 = vector.broadcast %56 : vector<4x1xf32> to vector<4x128xf32>
    %58 = arith.addf %55, %57 : vector<4x128xf32>
    %59 = vector.extract_strided_slice %58 {offsets = [0, 0], sizes = [1, 128], strides = [1, 1]} : vector<4x128xf32> to vector<1x128xf32>
    %c0_36 = arith.constant 0 : index
    %c0_37 = arith.constant 0 : index
    %c0_38 = arith.constant 0 : index
    %60 = vector.load %arg9[%c0_36, %c0_37, %c0_38] : memref<1x4x128xf32, #tpu.memory_space<vmem>>, vector<1x1x128xf32>
    %61 = vector.shape_cast %60 : vector<1x1x128xf32> to vector<1x128xf32>
    %62 = vector.shape_cast %59 : vector<1x128xf32> to vector<1x1x128xf32>
    tpu.vector_store %arg9[%c0_36, %c0_37, %c0_38], %62 {strides = array<i32>} : memref<1x4x128xf32, #tpu.memory_space<vmem>>, vector<1x1x128xf32>,
    %63 = vector.extract_strided_slice %58 {offsets = [1, 0], sizes = [3, 128], strides = [1, 1]} : vector<4x128xf32> to vector<3x128xf32>
    %cst_39 = arith.constant 0.000000e+00 : f32
    %64 = vector.broadcast %cst_39 : f32 to vector<3x128xf32>
    %65 = arith.cmpf olt, %63, %64 : vector<3x128xf32>
    %cst_40 = arith.constant 0.000000e+00 : f32
    %66 = vector.broadcast %cst_40 : f32 to vector<3x128xf32>
    %67 = arith.subf %66, %63 : vector<3x128xf32>
    %68 = arith.select %65, %63, %67 : vector<3x128xi1>, vector<3x128xf32>
    %69 = math.exp %68 : vector<3x128xf32>
    %cst_41 = arith.constant 1.000000e+00 : f32
    %70 = vector.broadcast %cst_41 : f32 to vector<3x128xf32>
    %71 = arith.addf %70, %69 : vector<3x128xf32>
    %cst_42 = arith.constant 1.000000e+00 : f32
    %72 = vector.broadcast %cst_42 : f32 to vector<3x128xf32>
    %73 = arith.divf %72, %71 : vector<3x128xf32>
    %74 = arith.mulf %69, %73 : vector<3x128xf32>
    %75 = arith.select %65, %74, %73 : vector<3x128xi1>, vector<3x128xf32>
    %cst_43 = arith.constant 1.002000e+00 : f32
    %76 = vector.broadcast %cst_43 : f32 to vector<3x128xf32>
    %77 = arith.mulf %75, %76 : vector<3x128xf32>
    %cst_44 = arith.constant 1.000000e-03 : f32
    %78 = vector.broadcast %cst_44 : f32 to vector<3x128xf32>
    %79 = arith.subf %77, %78 : vector<3x128xf32>
    %c0_45 = arith.constant 0 : index
    %c1_46 = arith.constant 1 : index
    %c0_47 = arith.constant 0 : index
    %80 = vector.load %arg9[%c0_45, %c1_46, %c0_47] : memref<1x4x128xf32, #tpu.memory_space<vmem>>, vector<1x3x128xf32>
    %81 = vector.shape_cast %80 : vector<1x3x128xf32> to vector<3x128xf32>
    %82 = vector.shape_cast %79 : vector<3x128xf32> to vector<1x3x128xf32>
    tpu.vector_store %arg9[%c0_45, %c1_46, %c0_47], %82 {strides = array<i32>} : memref<1x4x128xf32, #tpu.memory_space<vmem>>, vector<1x3x128xf32>,
    return
  }
  func.func @transform_0(%arg0: i32, %arg1: i32) -> (i32, i32, i32, i32) {
    %c0_i32 = arith.constant 0 : i32
    %c0_i32_0 = arith.constant 0 : i32
    %c0_i32_1 = arith.constant 0 : i32
    return %arg0, %c0_i32, %arg1, %c0_i32_0 : i32, i32, i32, i32
  }
  func.func @transform_1(%arg0: i32, %arg1: i32) -> (i32, i32, i32) {
    %c0_i32 = arith.constant 0 : i32
    %c0_i32_0 = arith.constant 0 : i32
    return %arg0, %c0_i32, %arg1 : i32, i32, i32
  }
  func.func @transform_2(%arg0: i32, %arg1: i32) -> (i32, i32) {
    %c0_i32 = arith.constant 0 : i32
    %c0_i32_0 = arith.constant 0 : i32
    %c0_i32_1 = arith.constant 0 : i32
    return %c0_i32, %c0_i32_0 : i32, i32
  }
  func.func @transform_3(%arg0: i32, %arg1: i32) -> (i32, i32) {
    %c0_i32 = arith.constant 0 : i32
    %c0_i32_0 = arith.constant 0 : i32
    %c0_i32_1 = arith.constant 0 : i32
    return %c0_i32, %c0_i32_0 : i32, i32
  }
  func.func @transform_4(%arg0: i32, %arg1: i32) -> (i32, i32) {
    %c0_i32 = arith.constant 0 : i32
    %c0_i32_0 = arith.constant 0 : i32
    %c0_i32_1 = arith.constant 0 : i32
    return %c0_i32, %c0_i32_0 : i32, i32
  }
  func.func @transform_5(%arg0: i32, %arg1: i32) -> (i32, i32) {
    %c0_i32 = arith.constant 0 : i32
    %c0_i32_0 = arith.constant 0 : i32
    %c0_i32_1 = arith.constant 0 : i32
    return %c0_i32, %c0_i32_0 : i32, i32
  }
  func.func @transform_6(%arg0: i32, %arg1: i32) -> (i32, i32) {
    %c0_i32 = arith.constant 0 : i32
    %c0_i32_0 = arith.constant 0 : i32
    %c0_i32_1 = arith.constant 0 : i32
    return %c0_i32, %c0_i32_0 : i32, i32
  }
  func.func @transform_7(%arg0: i32, %arg1: i32) -> (i32, i32, i32) {
    %c0_i32 = arith.constant 0 : i32
    %c0_i32_0 = arith.constant 0 : i32
    return %arg0, %c0_i32, %arg1 : i32, i32, i32
  }
}

</mosaic_0001>

<bundles_post_ra>
// kernel: tpu_custom_call.1
= control target key start
LH: loop header
LB: loop body
LE: loop exit
PB: predicated region body
PF: predicated region fallthrough
CT: control target
= control target key end

     0   :  { %12 = vsyncpa [#allocation3], 0  ;;  %s1976_s0 = inlined_call_operand.vmem [shape: f32[2,3,128,16], index: 0, kind: input, shape index: {}]   ;;  %s1977_s1 = inlined_call_operand.vmem [shape: f32[2,8,128], index: 1, kind: input, shape index: {}]   ;;  %s1978_s2 = inlined_call_operand.vmem [shape: f32[64,16], index: 2, kind: input, shape index: {}]   ;;  %s1979_s3 = inlined_call_operand.vmem [shape: f32[64,72], index: 3, kind: input, shape index: {}]   ;;  %s1980_s4 = inlined_call_operand.vmem [shape: f32[64,1], index: 4, kind: input, shape index: {}]   ;;  %s1981_s5 = inlined_call_operand.vmem [shape: f32[4,64], index: 5, kind: input, shape index: {}]   ;;  %s1982_s6 = inlined_call_operand.vmem [shape: f32[4,1], index: 6, kind: input, shape index: {}]   ;;  %s1983_s7 = inlined_call_operand.hbm [shape: f32[2,4,128], index: 7, kind: output, shape index: {}]  }
   0x1   :  { %14 = vsyncpa [#allocation3 + $0x1], 0  ;;  %s1567_s24 = smov 0   ;;  %s1569_s25 = smov 0  }
   0x2   :  { %s1571_s26 = smov 0   ;;  %s1573_s27 = smov 0  }
   0x3   :  { %s1575_s28 = smov 0   ;;  %s1577_s29 = smov 0  }
   0x4 LB: > { %s1222_s30 = sadd.s32 4294967295, %s1518_s29   ;;  %s1223_s8 = sadd.s32 4294967294, %s1518_s29   ;;  %s1518_s29 = sphi %s1577_s29, %s20_s29   ;;  %s1514_s28 = sphi %s1575_s28, %s1990_s28   ;;  %s1510_s27 = sphi %s1573_s27, %s1989_s27   ;;  %s1506_s26 = sphi %s1571_s26, %s1988_s26   ;;  %s1502_s25 = sphi %s1569_s25, %s1987_s25   ;;  %s1498_s24 = sphi %s1567_s24, %s1986_s24  }
   0x5   : > { %s32_s9 = sadd.s32 1, %s1514_s28  ;;  %s202_s10 = sadd.s32 1, %s1506_s26 }
   0x6   : > { %p34_p0 = scmp.ge.s32.totalorder %s32_s9, 2  ;;  %p212_p1 = scmp.ne.s32.totalorder %s1506_s26, %s1502_s25 }
   0x7   : > { %p213_p2 = scmp.eq.s32.totalorder %s1222_s30, 1  ;;  %p218_p3 = scmp.ne.s32.totalorder %s1502_s25, %s1498_s24 }
   0x8   : > { %s1992_s9 = smov (%p34_p0, %s32_s9), 0  ;;  %p219_p5 = scmp.eq.s32.totalorder %s1223_s8, 1 }
   0x9   : > { %p1607_p4 = por %p213_p2, %p212_p1  ;;  %s197_s12 = ssub.s32 %s1514_s28, %s1992_s9 }
   0xa   : > { %p1226_p6 = scmp.ge.s32.totalorder %s1518_s29, 1  ;;  %p200_p7 = scmp.eq.s32.totalorder %s197_s12, 0 }
   0xb   : > { %p1614_p8 = por %p219_p5, %p218_p3  ;;  %p275_p9 = scmp.lt.s32.totalorder %s1518_s29, 3 }
   0xc   : > { %s1620_s14 = scalar_select %p200_p7, %s1506_s26, %s202_s10  }
   0xd   : > { %p276_p10 = pnand %p1226_p6, %p275_p9 }
   0xe   : > { %p319_p11 = scmp.lt.s32.totalorder (!%p276_p10), %s1510_s27, 1  ;;  %s315_s30 = sand.u32 (!%p276_p10), 1, %s1502_s25  }
   0xf   : > { %279 = sbr.rel (%p276_p10) target bundleno = 552 (0x228), region = 48  ;;  %s1227_s8 = sshll.u32 (!%p276_p10), %s315_s30, 2 }
  0x10   : > { %s1931_s10 = scalar_lea.vmem (!%p276_p10), [#allocation2], %s1227_s8  ;;  %s1303_s12 = sshll.u32 (!%p276_p10), %s1510_s27, 2 }
  0x11   : > { %s1130_s18 = sshll.u32 (!%p276_p10), %s1931_s10, 4  ;;  %s1460_s8 = scalar_lea.hbm (!%p276_p10), %s1983_s7, 8  ;;  %s1131_s18 = int_to_ptr.vmem [resolvable:$true] %s1130_s18 }
  0x14   : > { %s320_s15 = scalar_select %p319_p11, %s1510_s27, 1  ;;  %v1520_v0 = vmov 0   ;;  %vm824_vm0 = vcmask 130048   ;;  %v1521_v37 = vmov 683565275  }
  0x15   : > { %1402 = vset.pattern.permute.xlu1 %v1520_v0  ;;  %1401 = vset.pattern.permute.xlu0 %v1520_v0  ;;  %v1522_v39 = vmov 2475754826   ;;  %v1523_v42 = vmov 2131351028   ;;  %v1524_v44 = vmov 2102212464  }
  0x16   : > { %s1338_s16 = smul.u32 384, %s320_s15  ;;  %s1229_s17 = sshll.u32 %s320_s15, 3  ;;  %1403 = vset.pattern.permute.xlu2 %v1520_v0  ;;  %v1525_v51 = vmov 920167782   ;;  %v1526_v54 = vmov 1326507024  }
  0x17   : > { %s334_s20 = scalar_lea.vmem %s1977_s1, %s1229_s17  ;;  %s1128_s17 = scalar_lea.hbm %s1983_s7, %s1303_s12 }
  0x18   : > { %s1633_s23 = scalar_lea.vmem %s1976_s0, %s1338_s16  ;;  %v1635_v1 = vld [vmem:[%s334_s20] sm:$0xff]  ;;  %s1132_s19 = sshll.u32 %s1128_s17, 4  ;;  %s1133_s19 = int_to_ptr.hbm [resolvable:$true] %s1132_s19 }
  0x19   : > { %v350_v2 = vld [vmem:[%s1633_s23 + $0x78] sm:$0xff]  ;;  %v429_v5 = vand.u32 2139095040, %v1635_v1  ;;  %v349_v7 = vld [vmem:[%s1633_s23 + $0x70] sm:$0xff]  ;;  %v348_v11 = vld [vmem:[%s1633_s23 + $0x68] sm:$0xff]  ;;  %v426_v15 = vand.u32 2147483647, %v1635_v1 }
  0x1a   : > { %v1245_v3 = vld [vmem:[%s1633_s23 + $0xf8] sm:$0xff]  ;;  %v1244_v8 = vld [vmem:[%s1633_s23 + $0xf0] sm:$0xff]  ;;  %v1243_v12 = vld [vmem:[%s1633_s23 + $0xe8] sm:$0xff]  ;;  %vm428_vm13 = vcmp.lt.s32.totalorder %v1635_v1, 0  ;;  %s1117_s27 = scalar_lea.sflag [#allocation3], %s315_s30  ;;  %s1454_s20 = sshra.s32 %s1133_s19, 4  ;;  %s1455_s20 = int_to_ptr.hbm [resolvable:$true] %s1454_s20 }
  0x1b   : > { %v1261_v4 = vld [vmem:[%s1633_s23 + $0x178] sm:$0xff]  ;;  %v400_v6 = vmul.f32 %v1245_v3, %v350_v2  ;;  %v1260_v9 = vld [vmem:[%s1633_s23 + $0x170] sm:$0xff]  ;;  %v399_v10 = vmul.f32 %v1244_v8, %v349_v7  ;;  %v430_v13 = vshrl.u32 %v429_v5, 23  ;;  %v398_v18 = vmul.f32 %v1243_v12, %v348_v11  ;;  %v1259_v19 = vld [vmem:[%s1633_s23 + $0x168] sm:$0xff]  ;;  %s1456_s21 = scalar_lea.hbm %s1455_s20, 4  ;;  %p1461_p1 = scmp.lt.s32.totalorder %s1455_s20, %s1983_s7 }
  0x1c   : > { %v347_v20 = vld [vmem:[%s1633_s23 + $0x60] sm:$0xff]  ;;  %v433_v23 = vand.u32 8388607, %v426_v15  ;;  %v346_v24 = vld [vmem:[%s1633_s23 + $0x58] sm:$0xff]  ;;  %v345_v32 = vld [vmem:[%s1633_s23 + $0x50] sm:$0xff]  ;;  %p1457_p12 = scmp.ne.s32.totalorder %s1455_s20, %s1456_s21  ;;  %p1462_p2 = scmp.lt.s32.totalorder %s1460_s8, %s1456_s21 }
  0x1d   : > { %v416_v14 = vmul.f32 %v1261_v4, %v400_v6  ;;  %v1262_v16 = vadd.s32 4294967169, %v430_v13  ;;  %v415_v17 = vmul.f32 %v1260_v9, %v399_v10  ;;  %v1242_v21 = vld [vmem:[%s1633_s23 + $0xe0] sm:$0xff]  ;;  %v1241_v25 = vld [vmem:[%s1633_s23 + $0xd8] sm:$0xff]  ;;  %v414_v26 = vmul.f32 %v1259_v19, %v398_v18  ;;  %v1240_v33 = vld [vmem:[%s1633_s23 + $0xd0] sm:$0xff] }
  0x1e   : > { %v397_v27 = vmul.f32 %v1242_v21, %v347_v20  ;;  %v1258_v29 = vld [vmem:[%s1633_s23 + $0x160] sm:$0xff]  ;;  %v396_v31 = vmul.f32 %v1241_v25, %v346_v24  ;;  %v434_v34 = vor.u32 8388608, %v433_v23  ;;  %v1257_v46 = vld [vmem:[%s1633_s23 + $0x158] sm:$0xff]  ;;  %v395_v47 = vmul.f32 %v1240_v33, %v345_v32  ;;  %v344_v56 = vld [vmem:[%s1633_s23 + $0x48] sm:$0xff]  ;;  %p1458_p13 = pnand %p1457_p12, %p1607_p4  ;;  %p1463_p3 = por %p1462_p2, %p1461_p1 }
  0x1f   : > { %1276 = vmatpush.xpose.msk.msra.mxu1 %vm824_vm0, %v416_v14  ;;  %1306 = vmatpush.xpose.msk.msra.mxu2 %vm824_vm0, %v416_v14  ;;  %v436_v22 = vadd.s32 1, %v1262_v16  ;;  %v1239_v57 = vld [vmem:[%s1633_s23 + $0xc8] sm:$0xff]  ;;  %v1256_v2 = vld [vmem:[%s1633_s23 + $0x150] sm:$0xff]  ;;  %v343_v9 = vld [vmem:[%s1633_s23 + $0x40] sm:$0xff]  ;;  %vm427_vm14 = vcmp.le.f32.partialorder %v426_v15, 0.7853982 }
  0x20   : > { %1307 = vmatpush.xpose.msk.msra.mxu3 %vm824_vm0, %v416_v14  ;;  %v413_v41 = vmul.f32 %v1258_v29, %v397_v27  ;;  %v1682_v60 = vshll.u32 %v434_v34, 8  ;;  %v412_v61 = vmul.f32 %v1257_v46, %v396_v31  ;;  %v1255_v4 = vld [vmem:[%s1633_s23 + $0x148] sm:$0xff]  ;;  %v394_v5 = vmul.f32 %v1239_v57, %v344_v56  ;;  %v1238_v10 = vld [vmem:[%s1633_s23 + $0xc0] sm:$0xff]  ;;  %v1237_v27 = vld [vmem:[%s1633_s23 + $0xb8] sm:$0xff]  ;;  %p1459_p0 = pneg %p1458_p13 }
  0x21   : > { %vm437_vm1 = vcmp.gt.s32.totalorder %v436_v22, 0  ;;  %v411_v16 = vmul.f32 %v1256_v2, %v395_v47  ;;  %v393_v23 = vmul.f32 %v1238_v10, %v343_v9  ;;  %v1254_v32 = vld [vmem:[%s1633_s23 + $0x140] sm:$0xff] }
  0x22   : > { %v438_v28 = vsel %vm437_vm1, %v436_v22, 0  ;;  %v475_v13 = vand.u32 65535, %v1682_v60  ;;  %v476_v14 = vshrl.u32 %v1682_v60, 16  ;;  %v410_v22 = vmul.f32 %v1255_v4, %v394_v5  ;;  %v340_v4 = vld [vmem:[%s1633_s23 + $0x28] sm:$0xff]  ;;  %p1464_p5 = pnand %p1463_p3, %p1459_p0 }
  0x23   : > { %1277 = vmatpush.xpose.msk.msra.mxu1 %vm824_vm0, %v415_v17  ;;  %1308 = vmatpush.xpose.msk.msra.mxu2 %vm824_vm0, %v415_v17  ;;  %v440_v30 = vand.u32 31, %v438_v28  ;;  %v1663_v35 = vshrl.u32 %v438_v28, 5  ;;  %v1235_v5 = vld [vmem:[%s1633_s23 + $0xa8] sm:$0xff] }
  0x24   : > { %1309 = vmatpush.xpose.msk.msra.mxu3 %vm824_vm0, %v415_v17 }
  0x25   : > { %v1665_v36 = vsub.s32 32, %v440_v30  ;;  %v443_v38 = vshll.u32 %v1521_v37, %v440_v30  ;;  %v446_v40 = vshll.u32 %v1522_v39, %v440_v30  ;;  %v449_v43 = vshll.u32 %v1523_v42, %v440_v30 }
  0x26   : > { %v452_v45 = vshll.u32 %v1524_v44, %v440_v30  ;;  %v455_v53 = vshll.u32 %v1525_v51, %v440_v30  ;;  %vm458_vm2 = vcmp.lt.s32.totalorder %v1663_v35, 1  ;;  %vm459_vm3 = vcmp.lt.s32.totalorder %v1663_v35, 2 }
  0x27   : > { %1278 = vmatpush.xpose.msk.msra.mxu1 %vm824_vm0, %v414_v26  ;;  %1310 = vmatpush.xpose.msk.msra.mxu2 %vm824_vm0, %v414_v26  ;;  %v444_v48 = vshrl.u32 %v1522_v39, %v1665_v36  ;;  %v447_v49 = vshrl.u32 %v1523_v42, %v1665_v36  ;;  %v450_v50 = vshrl.u32 %v1524_v44, %v1665_v36  ;;  %vm460_vm4 = vcmp.lt.s32.totalorder %v1663_v35, 3 }
  0x28   : > { %1311 = vmatpush.xpose.msk.msra.mxu3 %vm824_vm0, %v414_v26  ;;  %v453_v52 = vshrl.u32 %v1525_v51, %v1665_v36  ;;  %v456_v55 = vshrl.u32 %v1526_v54, %v1665_v36  ;;  %vm461_vm5 = vcmp.lt.s32.totalorder %v1663_v35, 4  ;;  %v342_v26 = vld [vmem:[%s1633_s23 + $0x38] sm:$0xff]  ;;  %v442_v28 = vshrl.u32 %v1521_v37, %v1665_v36  ;;  %v1234_v35 = vld [vmem:[%s1633_s23 + $0xa0] sm:$0xff] }
  0x29   : > { %v445_v58 = vor.u32 %v444_v48, %v443_v38  ;;  %v1679_v59 = vor.u32 %v447_v49, %v446_v40  ;;  %v451_v62 = vor.u32 %v450_v50, %v449_v43  ;;  %v392_v36 = vmul.f32 %v1237_v27, %v342_v26  ;;  %v1253_v51 = vld [vmem:[%s1633_s23 + $0x138] sm:$0xff] }
  0x2a   : > { %v454_v63 = vor.u32 %v453_v52, %v452_v45  ;;  %v457_v3 = vor.u32 %v456_v55, %v455_v53  ;;  %v409_v45 = vmul.f32 %v1254_v32, %v393_v23  ;;  %v341_v52 = vld [vmem:[%s1633_s23 + $0x30] sm:$0xff] }
  0x2b   : > { %1279 = vmatpush.xpose.msk.msra.mxu1 %vm824_vm0, %v413_v41  ;;  %1312 = vmatpush.xpose.msk.msra.mxu2 %vm824_vm0, %v413_v41  ;;  %v466_v6 = vsel %vm458_vm2, %v445_v58, %v1679_v59  ;;  %v470_v8 = vsel %vm458_vm2, %v1679_v59, %v451_v62  ;;  %v463_v39 = vsel %vm461_vm5, %v451_v62, 2102212464  ;;  %v462_v46 = vsel %vm458_vm2, %v442_v28, %v445_v58  ;;  %v1236_v53 = vld [vmem:[%s1633_s23 + $0xb0] sm:$0xff] }
  0x2c   : > { %1313 = vmatpush.xpose.msk.msra.mxu3 %vm824_vm0, %v413_v41  ;;  %v467_v7 = vsel %vm461_vm5, %v454_v63, 920167782  ;;  %v471_v12 = vsel %vm461_vm5, %v457_v3, 1326507024  ;;  %v464_v48 = vsel %vm460_vm4, %v1679_v59, %v463_v39  ;;  %v408_v2 = vmul.f32 %v1253_v51, %v392_v36 }
  0x2d   : > { %v468_v11 = vsel %vm460_vm4, %v451_v62, %v467_v7  ;;  %v472_v18 = vsel %vm460_vm4, %v454_v63, %v471_v12  ;;  %v391_v3 = vmul.f32 %v1236_v53, %v341_v52  ;;  %v465_v9 = vsel %vm459_vm3, %v462_v46, %v464_v48 }
  0x2e   : > { %v469_v17 = vsel %vm459_vm3, %v466_v6, %v468_v11  ;;  %v473_v19 = vsel %vm459_vm3, %v470_v8, %v472_v18  ;;  %v1252_v8 = vld [vmem:[%s1633_s23 + $0x130] sm:$0xff]  ;;  %v390_v12 = vmul.f32 %v1235_v5, %v340_v4  ;;  %v1251_v18 = vld [vmem:[%s1633_s23 + $0x128] sm:$0xff] }
  0x2f   : > { %1280 = vmatpush.xpose.msk.msra.mxu1 %vm824_vm0, %v412_v61  ;;  %1314 = vmatpush.xpose.msk.msra.mxu2 %vm824_vm0, %v412_v61  ;;  %v499_v20 = vand.u32 65535, %v469_v17  ;;  %v500_v21 = vshrl.u32 %v469_v17, 16  ;;  %v477_v24 = vand.u32 65535, %v473_v19  ;;  %v478_v25 = vshrl.u32 %v473_v19, 16  ;;  %v339_v19 = vld [vmem:[%s1633_s23 + $0x20] sm:$0xff] }
  0x30   : > { %1315 = vmatpush.xpose.msk.msra.mxu3 %vm824_vm0, %v412_v61  ;;  %v519_v17 = vmul.u32 %v1682_v60, %v465_v9  ;;  %v389_v23 = vmul.f32 %v1234_v35, %v339_v19  ;;  %v1247_v19 = vld [vmem:[%s1633_s23 + $0x108] sm:$0xff] }
  0x31   : > { %v501_v29 = vmul.u32 %v499_v20, %v475_v13  ;;  %v502_v30 = vmul.u32 %v500_v21, %v475_v13  ;;  %v503_v31 = vmul.u32 %v499_v20, %v476_v14  ;;  %v479_v33 = vmul.u32 %v477_v24, %v475_v13 }
  0x32   : > { %v480_v34 = vmul.u32 %v478_v25, %v475_v13  ;;  %v481_v38 = vmul.u32 %v477_v24, %v476_v14  ;;  %v504_v40 = vmul.u32 %v500_v21, %v476_v14  ;;  %v482_v37 = vmul.u32 %v478_v25, %v476_v14  ;;  %v1250_v25 = vld [vmem:[%s1633_s23 + $0x120] sm:$0xff] }
  0x33   : > { %1281 = vmatpush.xpose.msk.msra.mxu1 %vm824_vm0, %v411_v16  ;;  %1316 = vmatpush.xpose.msk.msra.mxu2 %vm824_vm0, %v411_v16  ;;  %v505_v41 = vshll.u32 %v502_v30, 16  ;;  %v507_v42 = vshll.u32 %v503_v31, 16  ;;  %v506_v55 = vshrl.u32 %v502_v30, 16  ;;  %v508_v62 = vshrl.u32 %v503_v31, 16 }
  0x34   : > { %1317 = vmatpush.xpose.msk.msra.mxu3 %vm824_vm0, %v411_v16  ;;  %v483_v43 = vshll.u32 %v480_v34, 16  ;;  %v485_v44 = vshll.u32 %v481_v38, 16  ;;  %v484_v57 = vshrl.u32 %v480_v34, 16  ;;  %v486_v6 = vshrl.u32 %v481_v38, 16 }
  0x35   : > { %vm509_vm6 = vc.u32 %v501_v29, %v505_v41  ;;  %v511_v47 = vadd.s32 %v505_v41, %v501_v29  ;;  %v407_v14 = vmul.f32 %v1252_v8, %v391_v3  ;;  %v405_v26 = vmul.f32 %v1250_v25, %v389_v23  ;;  %v1232_v3 = vld [vmem:[%s1633_s23 + $0x90] sm:$0xff]  ;;  %v1230_v23 = vld [vmem:[%s1633_s23 + $0x80] sm:$0xff] }
  0x36   : > { %vm487_vm7 = vc.u32 %v479_v33, %v483_v43  ;;  %v489_v49 = vadd.s32 %v483_v43, %v479_v33  ;;  %v510_v50 = vsel %vm509_vm6, 1, %v1520_v0  ;;  %v1248_v8 = vld [vmem:[%s1633_s23 + $0x110] sm:$0xff]  ;;  %vm569_vm6 = vweird.f32 %v1635_v1 }
  0x37   : > { %1282 = vmatpush.xpose.msk.msra.mxu1 %vm824_vm0, %v410_v22  ;;  %1318 = vmatpush.xpose.msk.msra.mxu2 %vm824_vm0, %v410_v22  ;;  %v488_v54 = vsel %vm487_vm7, 1, %v1520_v0  ;;  %v512_v56 = vadd.s32 %v510_v50, %v504_v40  ;;  %vm513_vm8 = vc.u32 %v511_v47, %v507_v42  ;;  %v515_v11 = vadd.s32 %v511_v47, %v507_v42 }
  0x38   : > { %1319 = vmatpush.xpose.msk.msra.mxu3 %vm824_vm0, %v410_v22  ;;  %v490_v58 = vadd.s32 %v488_v54, %v482_v37  ;;  %vm491_vm9 = vc.u32 %v489_v49, %v485_v44  ;;  %v514_v59 = vsel %vm513_vm8, 1, %v1520_v0  ;;  %v406_v22 = vmul.f32 %v1251_v18, %v390_v12  ;;  %v338_v54 = vld [vmem:[%s1633_s23 + $0x18] sm:$0xff]  ;;  %v1231_v12 = vld [vmem:[%s1633_s23 + $0x88] sm:$0xff] }
  0x39   : > { %v492_v61 = vsel %vm491_vm9, 1, %v1520_v0  ;;  %v516_v63 = vadd.s32 %v514_v59, %v512_v56  ;;  %vm758_vm7 = vcmask 588800  }
  0x3a   : > { %v494_v7 = vadd.s32 %v492_v61, %v490_v58  ;;  %v1249_v61 = vld [vmem:[%s1633_s23 + $0x118] sm:$0xff] }
  0x3b   : > { %1283 = vmatpush.xpose.msk.msra.mxu1 %vm824_vm0, %v409_v45  ;;  %1320 = vmatpush.xpose.msk.msra.mxu2 %vm824_vm0, %v409_v45  ;;  %v517_v0 = vadd.s32 %v516_v63, %v506_v55  ;;  %v1233_v55 = vld [vmem:[%s1633_s23 + $0x98] sm:$0xff] }
  0x3c   : > { %1321 = vmatpush.xpose.msk.msra.mxu3 %vm824_vm0, %v409_v45  ;;  %v495_v10 = vadd.s32 %v494_v7, %v484_v57  ;;  %v388_v56 = vmul.f32 %v1233_v55, %v338_v54 }
  0x3d   : > { %v518_v13 = vadd.s32 %v517_v0, %v508_v62 }
  0x3e   : > { %v496_v16 = vadd.s32 %v495_v10, %v486_v6  ;;  %v404_v62 = vmul.f32 %v1249_v61, %v388_v56  ;;  %v938_v56 = vld [vmem:[%s1980_s4] sm:$0xff]  ;;  %v419_v61 = vld [vmem:[%s1978_s2 + $0x10] sm:$0xff] }
  0x3f   : > { %1284 = vmatpush.xpose.msk.msra.mxu1 %vm824_vm0, %v408_v2  ;;  %1322 = vmatpush.xpose.msk.msra.mxu2 %vm824_vm0, %v408_v2  ;;  %v522_v20 = vadd.s32 1, %v518_v13 }
  0x40   : > { %1323 = vmatpush.xpose.msk.msra.mxu3 %vm824_vm0, %v408_v2  ;;  %vm521_vm10 = vc.u32 %v496_v16, %v515_v11  ;;  %v520_v34 = vadd.s32 %v515_v11, %v496_v16  ;;  %v337_v2 = vld [vmem:[%s1633_s23 + $0x10] sm:$0xff]  ;;  %v336_v11 = vld [vmem:[%s1633_s23 + $0x8] sm:$0xff] }
  0x41   : > { %v523_v21 = vsel %vm521_vm10, %v522_v20, %v518_v13  ;;  %v387_v5 = vmul.f32 %v1232_v3, %v337_v2  ;;  %v386_v16 = vmul.f32 %v1231_v12, %v336_v11  ;;  %v750_v2 = vld [vmem:[%s1979_s3] sm:$0xff]  ;;  %v422_v3 = vld [vmem:[%s1978_s2 + $0x28] sm:$0xff]  ;;  %v756_v12 = vld [vmem:[%s1979_s3 + $0x30] sm:$0xff] }
  0x42   : > { %v524_v24 = vadd.s32 %v523_v21, %v519_v17  ;;  %v755_v11 = vld [vmem:[%s1979_s3 + $0x28] sm:$0xff] }
  0x43   : > { %1285 = vmatpush.xpose.msk.msra.mxu1 %vm824_vm0, %v407_v14  ;;  %1324 = vmatpush.xpose.msk.msra.mxu2 %vm824_vm0, %v407_v14  ;;  %v403_v9 = vmul.f32 %v1248_v8, %v387_v5  ;;  %v402_v35 = vmul.f32 %v1247_v19, %v386_v16  ;;  %v423_v5 = vld [vmem:[%s1978_s2 + $0x30] sm:$0xff] }
  0x44   : > { %1325 = vmatpush.xpose.msk.msra.mxu3 %vm824_vm0, %v407_v14  ;;  %v525_v60 = vadd.s32 536870912, %v524_v24  ;;  %v940_v8 = vld [vmem:[%s1980_s4 + $0x10] sm:$0xff] }
  0x46   : > { %v526_v27 = vshrl.u32 %v525_v60, 30 }
  0x47   : > { %1286 = vmatpush.xpose.msk.msra.mxu1 %vm824_vm0, %v406_v22  ;;  %1326 = vmatpush.xpose.msk.msra.mxu2 %vm824_vm0, %v406_v22 }
  0x48   : > { %1327 = vmatpush.xpose.msk.msra.mxu3 %vm824_vm0, %v406_v22  ;;  %v527_v28 = vshll.u32 %v526_v27, 30  ;;  %v550_v48 = vsub.s32 4, %v526_v27  ;;  %v335_v22 = vld [vmem:[%s1633_s23] sm:$0xff] }
  0x4a   : > { %v528_v29 = vsub.s32 %v524_v24, %v527_v28  ;;  %v551_v51 = vsel %vm428_vm13, %v550_v48, %v526_v27  ;;  %v385_v24 = vmul.f32 %v1230_v23, %v335_v22  ;;  %v943_v27 = vld [vmem:[%s1980_s4 + $0x28] sm:$0xff] }
  0x4b   : > { %1287 = vmatpush.xpose.msk.msra.mxu1 %vm824_vm0, %v405_v26  ;;  %1328 = vmatpush.xpose.msk.msra.mxu2 %vm824_vm0, %v405_v26  ;;  %v553_v57 = vsel %vm427_vm14, 0, %v551_v51  ;;  %v418_v51 = vld [vmem:[%s1978_s2 + $0x8] sm:$0xff] }
  0x4c   : > { %1329 = vmatpush.xpose.msk.msra.mxu3 %vm824_vm0, %v405_v26  ;;  %vm529_vm11 = vcmp.lt.s32.totalorder %v528_v29, 0  ;;  %v530_v30 = vsub.s32 0, %v528_v29  ;;  %v570_v4 = vadd.s32 3, %v553_v57  ;;  %v725_v14 = vand.u32 3, %v553_v57  ;;  %v1246_v26 = vld [vmem:[%s1633_s23 + $0x100] sm:$0xff]  ;;  %973 = vperm.xlu1 %1402, %v943_v27  }
  0x4d   : > { %v401_v28 = vmul.f32 %v1246_v26, %v385_v24 }
  0x4e   : > { %v531_v31 = vsel %vm529_vm11, %v530_v30, %v528_v29  ;;  %v571_v13 = vand.u32 3, %v570_v4  ;;  %vm730_vm1 = vcmp.eq.s32.totalorder %v725_v14, 2  ;;  %vm727_vm4 = vcmp.eq.s32.totalorder %v725_v14, 0  ;;  %v751_v4 = vld [vmem:[%s1979_s3 + $0x8] sm:$0xff] }
  0x4f   : > { %v532_v32 = vclz %v531_v31  ;;  %1288 = vmatpush.xpose.msk.msra.mxu1 %vm824_vm0, %v404_v62  ;;  %1330 = vmatpush.xpose.msk.msra.mxu2 %vm824_vm0, %v404_v62  ;;  %vm726_vm5 = vcmp.lt.s32.totalorder %v725_v14, 2 }
  0x50   : > { %1331 = vmatpush.xpose.msk.msra.mxu3 %vm824_vm0, %v404_v62  ;;  %vm576_vm15 = vcmp.eq.s32.totalorder %v571_v13, 2  ;;  %vm572_vm2 = vcmp.lt.s32.totalorder %v571_v13, 2  ;;  %vm573_vm3 = vcmp.eq.s32.totalorder %v571_v13, 0  ;;  %v420_v62 = vld [vmem:[%s1978_s2 + $0x18] sm:$0xff] }
  0x51   : > { %v1263_v33 = vadd.s32 4294967294, %v532_v32  ;;  %v757_v13 = vld [vmem:[%s1979_s3 + $0x38] sm:$0xff] }
  0x53   : > { %vm1264_vm12 = vcmp.lt.s32.totalorder %v1263_v33, 0  ;;  %1289 = vmatpush.xpose.msk.msra.mxu1 %vm824_vm0, %v403_v9  ;;  %1332 = vmatpush.xpose.msk.msra.mxu2 %vm824_vm0, %v403_v9 }
  0x54   : > { %v535_v38 = vsel %vm1264_vm12, 0, %v1263_v33  ;;  %1333 = vmatpush.xpose.msk.msra.mxu3 %vm824_vm0, %v403_v9  ;;  %v753_v9 = vld [vmem:[%s1979_s3 + $0x18] sm:$0xff] }
  0x55   : > { %v536_v39 = vsub.s32 32, %v535_v38  ;;  %v537_v40 = vshll.u32 %v528_v29, %v535_v38  ;;  %v540_v41 = vsub.s32 4294967266, %v535_v38 }
  0x57   : > { %v538_v42 = vshrl.u32 %v520_v34, %v536_v39  ;;  %v541_v36 = vadd.s32 127, %v540_v41  ;;  %1290 = vmatpush.xpose.msk.msra.mxu1 %vm824_vm0, %v402_v35  ;;  %1334 = vmatpush.xpose.msk.msra.mxu2 %vm824_vm0, %v402_v35  ;;  %v417_v39 = vld [vmem:[%s1978_s2] sm:$0xff] }
  0x58   : > { %1335 = vmatpush.xpose.msk.msra.mxu3 %vm824_vm0, %v402_v35 }
  0x59   : > { %v539_v37 = vor.u32 %v538_v42, %v537_v40  ;;  %v542_v43 = vshll.u32 %v541_v36, 23  ;;  %v945_v42 = vld [vmem:[%s1980_s4 + $0x38] sm:$0xff] }
  0x5a   : > { %983 = vperm.xlu0 %1401, %v945_v42  }
  0x5b   : > { %v543_v44 = vor.u32 4788187, %v542_v43  ;;  %v546_v45 = vcvt.s32.f32 %v539_v37  ;;  %1291 = vmatpush.xpose.msk.msra.mxu1 %vm824_vm0, %v401_v28  ;;  %1336 = vmatpush.xpose.msk.msra.mxu2 %vm824_vm0, %v401_v28  ;;  %v942_v43 = vld [vmem:[%s1980_s4 + $0x20] sm:$0xff] }
  0x5c   : > { %1337 = vmatpush.xpose.msk.msra.mxu3 %vm824_vm0, %v401_v28  ;;  %968 = vperm.xlu1 %1402, %v942_v43  }
  0x5d   : > { %v544_v46 = vand.u32 2147483647, %v543_v44 }
  0x5e   : > { %1292 = vmatmul.msk.f32.vlgmr.msra.gmra.mxu1 %vm824_vm0, %v417_v39  ;;  %1295 = vmatmul.msk.f32.vlgmr.msra.gmra.mxu2 %vm824_vm0, %v420_v62 }
  0x5f   : > { %v547_v47 = vmul.f32 %v546_v45, %v544_v46  ;;  %1297 = vmatmul.msk.f32.vlgmr.msra.gmra.mxu3 %vm824_vm0, %v422_v3 }
  0x61   : > { %v548_v49 = vxor.u32 2147483648, %v547_v47 }
  0x63   : > { %v549_v50 = vsel %vm428_vm13, %v548_v49, %v547_v47 }
  0x64   : > { %v552_v52 = vsel %vm427_vm14, %v1635_v1, %v549_v50  ;;  %948 = vperm.xlu1 %1402, %v938_v56  }
  0x65   : > { %v554_v53 = vmul.f32 %v552_v52, %v552_v52 }
  0x66   : > { %1293 = vmatmul.msk.f32.gmra.mxu1 %vm824_vm0, %v418_v51 }
  0x67   : > { %v555_v58 = vmul.f32 -0.001358992, %v554_v53  ;;  %v562_v59 = vmul.f32 -0.00019511016, %v554_v53  ;;  %1298 = vmatmul.msk.f32.gmra.mxu3 %vm824_vm0, %v423_v5 }
  0x69   : > { %v556_v63 = vadd.f32 0.041655596, %v555_v58  ;;  %v563_v15 = vadd.f32 0.008332121, %v562_v59 }
  0x6b   : > { %v557_v6 = vmul.f32 %v556_v63, %v554_v53  ;;  %v564_v7 = vmul.f32 %v563_v15, %v554_v53  ;;  %v939_v63 = vld [vmem:[%s1980_s4 + $0x8] sm:$0xff]  ;;  %v421_v15 = vld [vmem:[%s1978_s2 + $0x20] sm:$0xff] }
  0x6c   : > { %1296 = vmatmul.msk.f32.gmra.mxu2 %vm824_vm0, %v421_v15 }
  0x6d   : > { %v558_v0 = vadd.f32 -0.4999988, %v557_v6  ;;  %v565_v10 = vadd.f32 -0.16666654, %v564_v7  ;;  %v752_v6 = vld [vmem:[%s1979_s3 + $0x10] sm:$0xff]  ;;  %v424_v7 = vld [vmem:[%s1978_s2 + $0x38] sm:$0xff] }
  0x6e   : > { %1294 = vmatmul.msk.f32.gmra.mxu1 %vm824_vm0, %v419_v61 }
  0x6f   : > { %v559_v17 = vmul.f32 %v558_v0, %v554_v53  ;;  %v566_v18 = vmul.f32 %v565_v10, %v554_v53  ;;  %1299 = vmatmul.msk.f32.gmra.mxu3 %vm824_vm0, %v424_v7  ;;  %v1059_v0 = vld [vmem:[%s1982_s6] sm:$0xf] }
  0x70   : > { %v754_v10 = vld [vmem:[%s1979_s3 + $0x20] sm:$0xff] }
  0x71   : > { %v560_v20 = vadd.f32 1.0, %v559_v17  ;;  %v567_v21 = vadd.f32 1.0, %v566_v18 }
  0x73   : > { %v568_v25 = vmul.f32 %v567_v21, %v552_v52  ;;  %v577_v60 = vxor.u32 2147483648, %v560_v20  ;;  %v944_v52 = vld [vmem:[%s1980_s4 + $0x30] sm:$0xff] }
  0x74   : > { %978 = vperm.xlu0 %1401, %v944_v52  }
  0x75   : > { %v574_v29 = vxor.u32 2147483648, %v568_v25  ;;  %v578_v30 = vsel %vm576_vm15, %v577_v60, %v568_v25  ;;  %v732_v31 = vsel %vm730_vm1, %v577_v60, %v568_v25  ;;  %vm1065_vm15 = vcmask 523264  }
  0x77   : > { %v575_v32 = vsel %vm573_vm3, %v560_v20, %v574_v29  ;;  %v729_v33 = vsel %vm727_vm4, %v560_v20, %v574_v29 }
  0x78   : > { %v579_v34 = vsel %vm572_vm2, %v575_v32, %v578_v30  ;;  %v733_v38 = vsel %vm726_vm5, %v729_v33, %v732_v31 }
  0x79   : > { %v580_v40 = vsel %vm569_vm6, nan, %v579_v34  ;;  %v734_v41 = vsel %vm569_vm6, nan, %v733_v38 }
  0x7a   : > { %v735_v36 = vmul.f32 2.0, %v580_v40  ;;  %v737_v37 = vmul.f32 %v580_v40, %v580_v40 }
  0x7c   : > { %v736_v44 = vmul.f32 %v735_v36, %v734_v41  ;;  %v738_v45 = vmul.f32 2.0, %v737_v37  ;;  %953 = vperm.xlu0 %1401, %v939_v63  }
  0x7e   : > { %v739_v46 = vsub.f32 1.0, %v738_v45  ;;  %v740_v47 = vmul.f32 2.0, %v736_v44  ;;  %v742_v48 = vmul.f32 %v736_v44, %v736_v44 }
  0x80   : > { %v741_v49 = vmul.f32 %v740_v47, %v739_v46  ;;  %v743_v50 = vmul.f32 2.0, %v742_v48 }
  0x82   : > { %v747_v53 = vmul.f32 %v741_v49, %v741_v49  ;;  %v744_v54 = vsub.f32 1.0, %v743_v50  ;;  %v745_v55 = vmul.f32 2.0, %v741_v49 }
  0x84   : > { %v748_v57 = vmul.f32 2.0, %v747_v53  ;;  %v746_v59 = vmul.f32 %v745_v55, %v744_v54 }
  0x86   : > { %v749_v58 = vsub.f32 1.0, %v748_v57 }
  0x88   : > { %790 = vmatpush.msra.mxu0 %v749_v58 }
  0x8a   : > { %791 = vmatpush.msra.mxu0 %v746_v59 }
  0x8c   : > { %792 = vmatpush.msra.mxu0 %v744_v54 }
  0x8e   : > { %793 = vmatpush.msra.mxu0 %v741_v49 }
  0x90   : > { %794 = vmatpush.msra.mxu0 %v739_v46 }
  0x92   : > { %795 = vmatpush.msra.mxu0 %v736_v44 }
  0x94   : > { %796 = vmatpush.msra.mxu0 %v734_v41 }
  0x96   : > { %797 = vmatpush.msra.mxu0 %v580_v40 }
  0x98   : > { %798 = vmatpush.msra.mxu0 %v1635_v1  ;;  %v941_v1 = vld [vmem:[%s1980_s4 + $0x18] sm:$0xff] }
  0x99   : > { %1268 = vmatmul.msk.f32.vlgmr.msra.gmra.mxu0 %vm758_vm7, %v750_v2  ;;  %963 = vperm.xlu2 %1403, %v941_v1  }
  0xa1   : > { %1269 = vmatmul.msk.f32.gmra.mxu0 %vm758_vm7, %v751_v4  ;;  %958 = vperm.xlu2 %1403, %v940_v8  }
  0xa9   : > { %1270 = vmatmul.msk.f32.gmra.mxu0 %vm758_vm7, %v752_v6  ;;  %1062 = vperm.xlu2 %1403, %v1059_v0  }
  0xb1   : > { %1271 = vmatmul.msk.f32.gmra.mxu0 %vm758_vm7, %v753_v9 }
  0xb9   : > { %1272 = vmatmul.msk.f32.gmra.mxu0 %vm758_vm7, %v754_v10 }
  0xbe   : > { %v974_v23 = vpop.permute.xlu1 %973 }
  0xc1   : > { %1273 = vmatmul.msk.f32.gmra.mxu0 %vm758_vm7, %v755_v11 }
  0xc9   : > { %1274 = vmatmul.msk.f32.gmra.mxu0 %vm758_vm7, %v756_v12 }
  0xcc   : > { %v984_v20 = vpop.permute.xlu0 %983 }
  0xce   : > { %v969_v30 = vpop.permute.xlu1 %968 }
  0xd1   : > { %1275 = vmatmul.msk.f32.gmra.mxu0 %vm758_vm7, %v757_v13 }
  0xd6   : > { %v949_v49 = vpop.permute.xlu1 %948 }
  0xdb   : > { %v914_v19 = vpop.f32.mrf.mxu1 }
  0xe1   : > { %v923_v21 = vpop.f32.mrf.mxu2 }
  0xe2   : > { %v929_v22 = vpop.f32.mrf.mxu3 }
  0xe3   : > { %v917_v24 = vpop.f32.mrf.mxu1 }
  0xe6   : > { %v979_v26 = vpop.permute.xlu0 %978 }
  0xea   : > { %v932_v29 = vpop.f32.mrf.mxu3 }
  0xeb   : > { %v920_v32 = vpop.f32.mrf.mxu1 }
  0xee   : > { %v954_v47 = vpop.permute.xlu0 %953 }
  0xef   : > { %v926_v27 = vpop.f32.mrf.mxu2 }
  0xf2   : > { %v935_v48 = vpop.f32.mrf.mxu3 }
  0xf3   : > { %v964_v60 = vpop.permute.xlu2 %963 }
  0xfb   : > { %v959_v36 = vpop.permute.xlu2 %958 }
 0x116   : > { %v800_v14 = vpop.f32.mrf.mxu0 }
 0x117   : > { %v915_v46 = vadd.f32 %v914_v19, %v800_v14 }
 0x119   : > { %v1906_v58 = vadd.f32 %v949_v49, %v915_v46 }
 0x11b   : > { %v1002_v3 = vmin.f32 %v1906_v58, 20.0  ;;  %vm994_vm14 = vcmp.gt.f32.partialorder %v1906_v58, 20.0 }
 0x11d   : > { %v1010_v8 = vmul.f32 1.442695, %v1002_v3 }
 0x11e   : > { %v803_v16 = vpop.f32.mrf.mxu0 }
 0x11f   : > { %v918_v44 = vadd.f32 %v917_v24, %v803_v16 }
 0x121   : > { %v1904_v56 = vadd.f32 %v954_v47, %v918_v44  ;;  %v1063_v47 = vpop.permute.xlu2 %1062 }
 0x123   : > { %v1003_v15 = vmin.f32 %v1904_v56, 20.0  ;;  %vm995_vm13 = vcmp.gt.f32.partialorder %v1904_v56, 20.0 }
 0x125   : > { %v1012_v6 = vmul.f32 1.442695, %v1003_v15 }
 0x126   : > { %v806_v17 = vpop.f32.mrf.mxu0 }
 0x127   : > { %v921_v40 = vadd.f32 %v920_v32, %v806_v17 }
 0x129   : > { %v1900_v50 = vadd.f32 %v959_v36, %v921_v40 }
 0x12b   : > { %v1004_v59 = vmin.f32 %v1900_v50, 20.0  ;;  %vm996_vm12 = vcmp.gt.f32.partialorder %v1900_v50, 20.0 }
 0x12d   : > { %v1014_v4 = vmul.f32 1.442695, %v1004_v59 }
 0x12e   : > { %v809_v18 = vpop.f32.mrf.mxu0 }
 0x12f   : > { %v924_v33 = vadd.f32 %v923_v21, %v809_v18 }
 0x131   : > { %v1896_v37 = vadd.f32 %v964_v60, %v924_v33 }
 0x133   : > { %v1005_v53 = vmin.f32 %v1896_v37, 20.0  ;;  %vm997_vm11 = vcmp.gt.f32.partialorder %v1896_v37, 20.0 }
 0x135   : > { %v1016_v63 = vmul.f32 1.442695, %v1005_v53 }
 0x136   : > { %v812_v35 = vpop.f32.mrf.mxu0 }
 0x137   : > { %v927_v31 = vadd.f32 %v926_v27, %v812_v35 }
 0x139   : > { %v1892_v41 = vadd.f32 %v969_v30, %v927_v31 }
 0x13b   : > { %v1006_v51 = vmin.f32 %v1892_v41, 20.0  ;;  %vm998_vm10 = vcmp.gt.f32.partialorder %v1892_v41, 20.0 }
 0x13d   : > { %v1018_v61 = vmul.f32 1.442695, %v1006_v51 }
 0x13e   : > { %v815_v25 = vpop.f32.mrf.mxu0 }
 0x13f   : > { %v930_v28 = vadd.f32 %v929_v22, %v815_v25 }
 0x141   : > { %v1890_v34 = vadd.f32 %v974_v23, %v930_v28 }
 0x143   : > { %v1007_v43 = vmin.f32 %v1890_v34, 20.0  ;;  %vm999_vm9 = vcmp.gt.f32.partialorder %v1890_v34, 20.0 }
 0x145   : > { %v1020_v54 = vmul.f32 1.442695, %v1007_v43 }
 0x146   : > { %v818_v38 = vpop.f32.mrf.mxu0 }
 0x147   : > { %v933_v39 = vadd.f32 %v932_v29, %v818_v38 }
 0x149   : > { %v1894_v42 = vadd.f32 %v979_v26, %v933_v39 }
 0x14b   : > { %v1008_v45 = vmin.f32 %v1894_v42, 20.0  ;;  %vm1000_vm8 = vcmp.gt.f32.partialorder %v1894_v42, 20.0 }
 0x14d   : > { %v1022_v52 = vmul.f32 1.442695, %v1008_v45 }
 0x14e   : > { %v821_v55 = vpop.f32.mrf.mxu0 }
 0x14f   : > { %v936_v57 = vadd.f32 %v935_v48, %v821_v55  ;;  %1404 = vpow2.f32 %v1022_v52 }
 0x150   : > { %1406 = vpow2.f32 %v1020_v54 }
 0x151   : > { %v993_v62 = vadd.f32 %v984_v20, %v936_v57  ;;  %1408 = vpow2.f32 %v1018_v61 }
 0x152   : > { %1410 = vpow2.f32 %v1016_v63 }
 0x153   : > { %v1009_v2 = vmin.f32 %v993_v62, 20.0  ;;  %vm1001_vm0 = vcmp.gt.f32.partialorder %v993_v62, 20.0 }
 0x155   : > { %v1024_v5 = vmul.f32 1.442695, %v1009_v2  ;;  %v1405_v1 = vpop.eup %1404 }
 0x156   : > { %v1407_v7 = vpop.eup %1406  ;;  %v1032_v9 = vadd.f32 1.0, %v1405_v1 }
 0x157   : > { %1412 = vpow2.f32 %v1024_v5  ;;  %v1409_v0 = vpop.eup %1408  ;;  %v1031_v10 = vadd.f32 1.0, %v1407_v7 }
 0x158   : > { %1414 = vpow2.f32 %v1014_v4  ;;  %v1411_v11 = vpop.eup %1410  ;;  %v1030_v14 = vadd.f32 1.0, %v1409_v0 }
 0x159   : > { %1416 = vpow2.f32 %v1012_v6  ;;  %v1029_v17 = vadd.f32 1.0, %v1411_v11 }
 0x15a   : > { %1418 = vpow2.f32 %v1010_v8 }
 0x15b   : > { %1420 = vlog2.f32 %v1032_v9 }
 0x15c   : > { %1422 = vlog2.f32 %v1031_v10 }
 0x15d   : > { %v1413_v12 = vpop.eup %1412 }
 0x15e   : > { %v1033_v13 = vadd.f32 1.0, %v1413_v12  ;;  %v1415_v16 = vpop.eup %1414 }
 0x15f   : > { %v1417_v18 = vpop.eup %1416  ;;  %v1028_v19 = vadd.f32 1.0, %v1415_v16 }
 0x160   : > { %1424 = vlog2.f32 %v1033_v13  ;;  %v1419_v35 = vpop.eup %1418  ;;  %v1027_v21 = vadd.f32 1.0, %v1417_v18 }
 0x161   : > { %1426 = vlog2.f32 %v1030_v14  ;;  %v1421_v20 = vpop.eup %1420  ;;  %v1026_v24 = vadd.f32 1.0, %v1419_v35 }
 0x162   : > { %1428 = vlog2.f32 %v1029_v17  ;;  %v1423_v22 = vpop.eup %1422  ;;  %v1047_v60 = vmul.f32 0.6931472, %v1421_v20 }
 0x163   : > { %1430 = vlog2.f32 %v1028_v19  ;;  %v1045_v28 = vmul.f32 0.6931472, %v1423_v22 }
 0x164   : > { %1432 = vlog2.f32 %v1027_v21  ;;  %v1056_v30 = vsel %vm1000_vm8, %v1894_v42, %v1047_v60 }
 0x165   : > { %1434 = vlog2.f32 %v1026_v24  ;;  %v1055_v33 = vsel %vm999_vm9, %v1890_v34, %v1045_v28 }
 0x166   : > { %v1425_v23 = vpop.eup %1424 }
 0x167   : > { %v1049_v25 = vmul.f32 0.6931472, %v1425_v23  ;;  %v1427_v26 = vpop.eup %1426 }
 0x168   : > { %v1429_v29 = vpop.eup %1428  ;;  %v1043_v31 = vmul.f32 0.6931472, %v1427_v26 }
 0x169   : > { %v1057_v27 = vsel %vm1001_vm0, %v993_v62, %v1049_v25  ;;  %v1431_v32 = vpop.eup %1430  ;;  %v1041_v38 = vmul.f32 0.6931472, %v1429_v29 }
 0x16a   : > { %1077 = vmatpush.msrb.mxu2 %v1057_v27  ;;  %v1433_v39 = vpop.eup %1432  ;;  %v1054_v40 = vsel %vm998_vm10, %v1892_v41, %v1043_v31  ;;  %v1039_v36 = vmul.f32 0.6931472, %v1431_v32 }
 0x16b   : > { %v1435_v43 = vpop.eup %1434  ;;  %v1053_v42 = vsel %vm997_vm11, %v1896_v37, %v1041_v38  ;;  %v1037_v44 = vmul.f32 0.6931472, %v1433_v39  ;;  %v1058_v37 = vld [vmem:[%s1981_s5] sm:$0xf] }
 0x16c   : > { %1078 = vmatpush.msrb.mxu2 %v1056_v30  ;;  %v1052_v34 = vsel %vm996_vm12, %v1900_v50, %v1039_v36  ;;  %v1035_v45 = vmul.f32 0.6931472, %v1435_v43 }
 0x16d   : > { %v1051_v41 = vsel %vm995_vm13, %v1904_v56, %v1037_v44 }
 0x16e   : > { %1079 = vmatpush.msrb.mxu2 %v1055_v33  ;;  %v1050_v46 = vsel %vm994_vm14, %v1906_v58, %v1035_v45 }
 0x170   : > { %1080 = vmatpush.msrb.mxu2 %v1054_v40 }
 0x172   : > { %1081 = vmatpush.msrb.mxu2 %v1053_v42 }
 0x174   : > { %1082 = vmatpush.msrb.mxu2 %v1052_v34 }
 0x176   : > { %1083 = vmatpush.msrb.mxu2 %v1051_v41 }
 0x178   : > { %1084 = vmatpush.msrb.mxu2 %v1050_v46 }
 0x179   : > { %1300 = vmatmul.msk.f32.vlgmr.msrb.gmra.mxu2 %vm1065_vm15, %v1058_v37 }
 0x1fc   : > { %v1086_v48 = vpop.f32.mrf.mxu2 }
 0x1fd   : > { %v1087_v49 = vadd.f32 %v1086_v48, %v1063_v47 }
 0x1ff   : > { %vm1090_vm1 = vcmp.lt.f32.partialorder %v1087_v49, 0.0  ;;  %v1091_v50 = vsub.f32 0.0, %v1087_v49  ;;  %1089 = vst [vmem:[%s1931_s10] sm:$0x1] %v1087_v49 }
 0x201   : > { %v1092_v51 = vsel %vm1090_vm1, %v1087_v49, %v1091_v50 }
 0x202   : > { %v1093_v52 = vmul.f32 1.442695, %v1092_v51 }
 0x204   : > { %1436 = vpow2.f32 %v1093_v52 }
 0x20a   : > { %v1437_v53 = vpop.eup %1436 }
 0x20b   : > { %v1095_v54 = vadd.f32 1.0, %v1437_v53 }
 0x20d   : > { %1438 = vrcp.f32 %v1095_v54  ;;  %v1107_v58 = vand.u32 2147483648, %v1095_v54  ;;  %v1105_v61 = vand.u32 2147483647, %v1095_v54  ;;  %vm1101_vm3 = vweird.f32 %v1095_v54 }
 0x20f   : > { %v1108_v63 = vor.u32 1.1754944e-38, %v1107_v58  ;;  %vm1106_vm5 = vcmp.eq.f32.partialorder %v1105_v61, 8.507059e+37 }
 0x213   : > { %v1439_v55 = vpop.eup %1438 }
 0x214   : > { %v1097_v56 = vmul.f32 %v1439_v55, %v1095_v54  ;;  %vm1102_vm2 = vweird.f32 %v1439_v55 }
 0x215   : > { %vm1103_vm4 = vmor %vm1101_vm3, %vm1102_vm2 }
 0x216   : > { %v1098_v57 = vsub.f32 1.0, %v1097_v56 }
 0x218   : > { %v1099_v59 = vmul.f32 %v1439_v55, %v1098_v57 }
 0x21a   : > { %v1100_v62 = vadd.f32 %v1439_v55, %v1099_v59 }
 0x21c   : > { %v1104_v15 = vsel %vm1103_vm4, %v1439_v55, %v1100_v62 }
 0x21d   : > { %v1109_v2 = vsel %vm1106_vm5, %v1108_v63, %v1104_v15 }
 0x21e   : > { %v1111_v3 = vmul.f32 %v1437_v53, %v1109_v2 }
 0x220   : > { %v1112_v4 = vsel %vm1090_vm1, %v1111_v3, %v1109_v2 }
 0x221   : > { %v1113_v5 = vmul.f32 1.002, %v1112_v4 }
 0x223   : > { %v1301_v1 = vadd.f32 -0.001, %v1113_v5 }
 0x225   : > { %1115 = vst [vmem:[%s1931_s10] sm:$0xe] %v1301_v1 }
 0x226   : > { %1467 = shalt.err (!%p1464_p5)
}
 0x227   : > { %1339 = dma.vmem_to_hbm [thread:$0]  (%p1607_p4), %s1131_s18, 64, %s1133_s19, %s1117_s27  }
 0x228 PF: > { %p1345_p6 = scmp.ge.s32.totalorder %s1518_s29, 2  ;;  %s1144_s30 = sand.u32 1, %s1498_s24  }
 0x229   : > { %s1145_s10 = scalar_lea.sflag [#allocation3], %s1144_s30 }
 0x22a   : > { %p1342_p7 = pnand %p1345_p6, %p1614_p8 }
 0x22c   : > { %p1343_p9 = pneg %p1342_p7 }
 0x22e   : > { %1493 = dma.done.wait (%p1343_p9), %s1145_s10, 64  }
 0x22f   : > { %1495 = vsyncadd (%p1343_p9), %s1145_s10, 4294967232  ;;  %s20_s29 = sadd.s32 1, %s1518_s29   ;;  %s1986_s24 = smov %s1502_s25 }
 0x230   : > { %p17_p10 = scmp.ge.s32.totalorder %s20_s29, 4   ;;  %s1987_s25 = smov %s1506_s26 }
 0x231   : > { %s1988_s26 = smov %s1620_s14  ;;  %s1989_s27 = smov %s1514_s28 }
 0x232   : > { %s1990_s28 = smov %s1992_s9  ;;  %19 = sbr.rel (!%p17_p10) target bundleno = 4 (0x4), region = 88 }
 0x237   :  { %1151 = vsyncpa [#allocation3], 1 }
 0x238   :  { %1153 = vsyncpa [#allocation3 + $0x1], 1 }

</bundles_post_ra>
